<compile_context>
chip_gen: v7x
topology: tpu7x:2x2x1
jax: 0.10.0
libtpu: 0.0.40
codegen_flags: <defaults>
</compile_context>

<pallas_src>
import jax
import jax.numpy as jnp
from jax.experimental import pallas as pl
from jax.experimental.pallas import tpu as pltpu


def _raysampler_kernel(od_ref, w_ref, pts_ref):
    """One (TR, 3*P) lane-dense tile of sample points via a tiny MXU matmul.

    pts_flat[r, 3*p + c] = od[r, c] * 1 + od[r, 3 + c] * z[p]
                         = origins[r, c] + z[p] * directions[r, c]
    """
    pts_ref[...] = jnp.dot(
        od_ref[...], w_ref[...],
        preferred_element_type=jnp.float32,
        precision=jax.lax.Precision.HIGHEST,   # keep full f32 accuracy on the MXU
    ).astype(pts_ref.dtype)


def stratified_raysampler(origins, directions, *, n_pts_per_ray, min_depth,
                          max_depth, tile_rays=None, out_dtype=jnp.float32):
    """Returns (sample_points (N, P, 3), sample_lengths (N, P, 1))."""
    n_rays = origins.shape[0]
    assert origins.shape == (n_rays, 3) and directions.shape == (n_rays, 3)
    P = int(n_pts_per_ray)
    lanes = 3 * P

    out_itemsize = jnp.dtype(out_dtype).itemsize
    padded_lanes = ((lanes + 127) // 128) * 128          # VMEM lane-padded width
    pack = max(8, 32 // out_itemsize)                    # sublane pack: f32=8, bf16=16, i8/fp8=32

    # --- tile sizing: budget the *padded* VMEM cost of the double-buffered output
    #     block plus the lane-padded (TR, 8)->(TR, 128) f32 input block.
    if tile_rays is None:
        budget_bytes = 12 * 1024 * 1024                  # under v5e's 16 MiB default scoped VMEM
        per_row = 2 * (padded_lanes * out_itemsize) + 2 * (128 * 4)
        tile_rays = max(pack, budget_bytes // per_row)
        # Don't pad tiny inputs up to a multi-MiB tile.
        tile_rays = min(tile_rays, ((n_rays + pack - 1) // pack) * pack)
    tile_rays = max(pack, (int(tile_rays) // pack) * pack)
    n_pad = int(pl.cdiv(n_rays, tile_rays)) * tile_rays

    # --- merged input: [origins | directions | 0 | 0]  -> (N, 8) f32 (single DMA stream)
    od = jnp.concatenate(
        [origins.astype(jnp.float32),
         directions.astype(jnp.float32),
         jnp.zeros((n_rays, 2), jnp.float32)], axis=1)
    if n_pad != n_rays:                                  # ragged tail -> pad, slice later
        od = jnp.pad(od, ((0, n_pad - n_rays), (0, 0)))

    # --- z values (matches torch.linspace) and the (8, 3P) mixing matrix W:
    #     W[c, 3p+c] = 1,  W[3+c, 3p+c] = z[p],  rows 6/7 are zero padding.
    z_vals = jnp.linspace(min_depth, max_depth, P, dtype=jnp.float32)        # (P,)
    lane = jnp.arange(lanes)
    coord = lane % 3                                                         # (3P,)
    z_per_lane = z_vals[lane // 3]                                           # (3P,)
    rows = jnp.arange(8)[:, None]                                            # (8, 1)
    w = ((rows == coord[None, :]).astype(jnp.float32)
         + (rows == (coord[None, :] + 3)).astype(jnp.float32) * z_per_lane[None, :])

    grid = (n_pad // tile_rays,)
    pts_flat = pl.pallas_call(
        _raysampler_kernel,
        out_shape=jax.ShapeDtypeStruct((n_pad, lanes), out_dtype),
        grid_spec=pltpu.PrefetchScalarGridSpec(
            num_scalar_prefetch=0,
            grid=grid,
            in_specs=[
                pl.BlockSpec((tile_rays, 8), lambda i: (i, 0)),     # [o|d|0|0] ray tile
                pl.BlockSpec((8, lanes), lambda i: (0, 0)),         # W (shared every step)
            ],
            out_specs=pl.BlockSpec((tile_rays, lanes), lambda i: (i, 0)),
        ),
        compiler_params=pltpu.CompilerParams(
            dimension_semantics=("parallel",),
            vmem_limit_bytes=32 * 1024 * 1024,
        ),
    )(od, w)

    # (n_pad, 3P) -> (N, P, 3) is a bit-exact row-major reshape (free).
    sample_points = pts_flat[:n_rays].reshape(n_rays, P, 3)
    # sample_lengths is just z broadcast over rays; keep it out of the kernel
    # (no (N, P, 1) masked-store path, ~25% less HBM write traffic).
    sample_lengths = jnp.broadcast_to(
        z_vals.astype(out_dtype).reshape(1, P, 1), (n_rays, P, 1))
    return sample_points, sample_lengths


if __name__ == "__main__":
    # Config analogous to the module's cfg
    n_pts_per_ray = 8
    min_depth = 1.0
    max_depth = 4.0

    n_rays = 60   # deliberately NOT a multiple of the ray tile (exercises padding)
    key = jax.random.PRNGKey(0)
    k_o, k_d = jax.random.split(key)
    origins = jax.random.normal(k_o, (n_rays, 3), dtype=jnp.float32)
    directions = jax.random.normal(k_d, (n_rays, 3), dtype=jnp.float32)

    # Pure-JAX reference for correctness
    z_ref = jnp.linspace(min_depth, max_depth, n_pts_per_ray,
                         dtype=jnp.float32)[:, None]                         # (P, 1)
    pts_ref = origins[:, None, :] + z_ref[None, :, :] * directions[:, None, :]
    lens_ref = jnp.broadcast_to(z_ref[None, :, :], (n_rays, n_pts_per_ray, 1))

    # 1) Small explicit tile -> multi-step grid path
    pts, lens = stratified_raysampler(
        origins, directions,
        n_pts_per_ray=n_pts_per_ray, min_depth=min_depth, max_depth=max_depth,
        tile_rays=16)
    jax.block_until_ready((pts, lens))
    assert pts.shape == (n_rays, n_pts_per_ray, 3)
    assert lens.shape == (n_rays, n_pts_per_ray, 1)
    assert jnp.allclose(pts, pts_ref, atol=1e-6)
    assert jnp.allclose(lens, lens_ref, atol=1e-6)

    # 2) Default (auto) tile sizing path
    pts2, lens2 = stratified_raysampler(
        origins, directions,
        n_pts_per_ray=n_pts_per_ray, min_depth=min_depth, max_depth=max_depth)
    jax.block_until_ready((pts2, lens2))
    assert jnp.allclose(pts2, pts_ref, atol=1e-6)
    assert jnp.allclose(lens2, lens_ref, atol=1e-6)

    print("KERNEL_OK")
</pallas_src>

<mosaic_0001>
module attributes {stable_mosaic.version = 11 : i64} {
  func.func @_raysampler_kernel(%arg0: i32, %arg1: memref<16x8xf32, #tpu.memory_space<vmem>>, %arg2: memref<8x24xf32, #tpu.memory_space<vmem>>, %arg3: memref<16x24xf32, #tpu.memory_space<vmem>>) attributes {dimension_semantics = [#tpu.dimension_semantics<parallel>], iteration_bounds = array<i64: 4>, scalar_prefetch = 0 : i64, scratch_operands = 0 : i64, tpu.core_type = #tpu.core_type<tc>, window_params = [{transform_indices = @transform_0, window_bounds = array<i64: 16, 8>}, {pipeline_mode = #tpu.pipeline_mode<synchronous>, transform_indices = @transform_1, window_bounds = array<i64: 8, 24>}, {transform_indices = @transform_2, window_bounds = array<i64: 16, 24>}]} {
    %c0 = arith.constant 0 : index
    %c0_0 = arith.constant 0 : index
    %0 = vector.load %arg1[%c0, %c0_0] : memref<16x8xf32, #tpu.memory_space<vmem>>, vector<16x8xf32>
    %c0_1 = arith.constant 0 : index
    %c0_2 = arith.constant 0 : index
    %1 = vector.load %arg2[%c0_1, %c0_2] : memref<8x24xf32, #tpu.memory_space<vmem>>, vector<8x24xf32>
    %cst = arith.constant dense<0.000000e+00> : vector<16x24xf32>
    %2 = tpu.matmul %0, %1, %cst {dimension_numbers = #tpu.dot_dimension_numbers<[1], [0], [0], [1], [0, 0, 1, 1], [], []>, precision = #tpu.contract_precision<fp32>} : vector<16x8xf32>, vector<8x24xf32>, vector<16x24xf32> -> vector<16x24xf32>
    %c0_3 = arith.constant 0 : index
    %c0_4 = arith.constant 0 : index
    %3 = vector.load %arg3[%c0_3, %c0_4] : memref<16x24xf32, #tpu.memory_space<vmem>>, vector<16x24xf32>
    tpu.vector_store %arg3[%c0_3, %c0_4], %2 {strides = array<i32>} : memref<16x24xf32, #tpu.memory_space<vmem>>, vector<16x24xf32>,
    return
  }
  func.func @transform_0(%arg0: i32) -> (i32, i32) {
    %c0_i32 = arith.constant 0 : i32
    %c0_i32_0 = arith.constant 0 : i32
    return %arg0, %c0_i32 : i32, i32
  }
  func.func @transform_1(%arg0: i32) -> (i32, i32) {
    %c0_i32 = arith.constant 0 : i32
    %c0_i32_0 = arith.constant 0 : i32
    %c0_i32_1 = arith.constant 0 : i32
    return %c0_i32, %c0_i32_0 : i32, i32
  }
  func.func @transform_2(%arg0: i32) -> (i32, i32) {
    %c0_i32 = arith.constant 0 : i32
    %c0_i32_0 = arith.constant 0 : i32
    return %arg0, %c0_i32 : i32, i32
  }
}

</mosaic_0001>

<bundles_post_ra>
// kernel: tpu_custom_call.1
= control target key start
LH: loop header
LB: loop body
LE: loop exit
PB: predicated region body
PF: predicated region fallthrough
CT: control target
= control target key end

     0   :  { %s805_s9 = smov 0   ;;  %s832_s0 = inlined_call_operand.vmem [shape: f32[64,8], index: 0, kind: input, shape index: {}]   ;;  %s833_s1 = inlined_call_operand.vmem [shape: f32[8,24], index: 1, kind: input, shape index: {}]   ;;  %s834_s2 = inlined_call_operand.vmem [shape: f32[64,24], index: 2, kind: output, shape index: {}]  }
   0x1 LB: > { %s705_s10 = sadd.s32 4294967295, %s788_s9   ;;  %p709_p0 = scmp.ge.s32.totalorder %s788_s9, 1  ;;  %s788_s9 = sphi %s805_s9, %s12_s9  }
   0x2   : > { %p113_p1 = scmp.lt.s32.totalorder %s788_s9, 5 }
   0x4   : > { %p114_p2 = pnand %p709_p0, %p113_p1 }
   0x5   : > { %v149_v0 = vld [vmem:[%s833_s1] sm:$0xff] (!%p114_p2)  ;;  %s710_s13 = sshll.u32 (!%p114_p2), %s705_s10, 1  ;;  %vm150_vm0 = vcmask (!%p114_p2), 64512   ;;  %vm646_vm1 = vcmask (!%p114_p2), 195584  }
   0x6   : > { %117 = sbr.rel (%p114_p2) target bundleno = 261 (0x105), region = 28  ;;  %v158_v1 = vand.u32 (!%p114_p2), 4294901760, %v149_v0  ;;  %p136_p3 = scmp.lt.s32.totalorder (!%p114_p2), %s710_s13, 7 }
   0x8   : > { %749 = vmatprep.subr.mxu0 (!%p114_p2), %v158_v1  ;;  %734 = vmatprep.subr.mxu1 (!%p114_p2), %v158_v1  ;;  %v245_v2 = vsub.f32 (!%p114_p2), %v149_v0, %v158_v1 }
   0x9   : > { %750 = vmatpush3.msra.mxu0 (!%p114_p2), %v158_v1  ;;  %735 = vmatpush3.msra.mxu1 (!%p114_p2), %v158_v1 }
   0xa   : > { %v246_v3 = vand.u32 (!%p114_p2), 4294901760, %v245_v2 }
   0xc   : > { %v247_v6 = vsub.f32 (!%p114_p2), %v245_v2, %v246_v3  ;;  %754 = vmatprep.subr.mxu0 (!%p114_p2), %v246_v3 }
   0xd   : > { %s836_s13 = smov (!%p136_p3, %s710_s13), 7 }
   0xe   : > { %s711_s14 = sshll.u32 %s836_s13, 3  ;;  %v248_v11 = vand.u32 4294901760, %v247_v6 }
   0xf   : > { %s139_s17 = scalar_lea.vmem %s832_s0, %s711_s14  ;;  %s145_s20 = scalar_lea.vmem %s834_s2, %s711_s14 }
  0x10   : > { %v147_v4 = vld [vmem:[%s139_s17] sm:$0xff]  ;;  %v148_v5 = vld [vmem:[%s139_s17 + $0x8] sm:$0xff]  ;;  %739 = vmatprep.subr.mxu1 %v248_v11 }
  0x11   : > { %v152_v7 = vsel %vm150_vm0, %v147_v4, 0  ;;  %v155_v8 = vsel %vm150_vm0, %v148_v5, 0 }
  0x12   : > { %v223_v9 = vand.u32 4294901760, %v152_v7  ;;  %v233_v10 = vand.u32 4294901760, %v155_v8 }
  0x14   : > { %v224_v12 = vsub.f32 %v152_v7, %v223_v9  ;;  %v234_v13 = vsub.f32 %v155_v8, %v233_v10 }
  0x16   : > { %v225_v14 = vand.u32 4294901760, %v224_v12  ;;  %v235_v15 = vand.u32 4294901760, %v234_v13 }
  0x18   : > { %751 = vmatprep.mubr.f32.mxu0 %v225_v14  ;;  %v226_v16 = vsub.f32 %v224_v12, %v225_v14  ;;  %v236_v17 = vsub.f32 %v234_v13, %v235_v15 }
  0x19   : > { %752 = vmatmul.mubr.f32.vlgmr.msra.gmra.mrb[0].mxu0 %v235_v15 }
  0x1a   : > { %v227_v18 = vand.u32 4294901760, %v226_v16  ;;  %v237_v19 = vand.u32 4294901760, %v236_v17  ;;  %755 = vmatpush3.msra.mxu0 %v246_v3  ;;  %756 = vmatprep.mubr.f32.mxu0 %v223_v9 }
  0x1b   : > { %759 = vmatprep.subr.mxu0 %v158_v1 }
  0x1c   : > { %736 = vmatprep.mubr.f32.mxu1 %v227_v18 }
  0x1d   : > { %737 = vmatmul.mubr.f32.vlgmr.msra.gmra.mrb[0].mxu1 %v237_v19 }
  0x1e   : > { %740 = vmatpush3.msra.mxu1 %v248_v11  ;;  %741 = vmatprep.mubr.f32.mxu1 %v223_v9 }
  0x1f   : > { %744 = vmatprep.subr.mxu1 %v245_v2 }
  0x21   : > { %757 = vmatmul.mubr.f32.vlgmr.msra.gmra.mrb[0].mxu0 %v233_v10 }
  0x22   : > { %760 = vmatpush3.msra.mxu0 %v158_v1  ;;  %761 = vmatprep.mubr.f32.mxu0 %v223_v9 }
  0x25   : > { %742 = vmatmul.mubr.f32.vlgmr.msra.gmra.mrb[0].mxu1 %v233_v10 }
  0x26   : > { %745 = vmatpush3.msra.mxu1 %v245_v2  ;;  %746 = vmatprep.mubr.f32.mxu1 %v224_v12 }
  0x29   : > { %762 = vmatmul.mubr.f32.vlgmr.msra.gmra.mrb[0].mxu0 %v233_v10 }
  0x2d   : > { %747 = vmatmul.mubr.f32.vlgmr.msra.gmra.mrb[0].mxu1 %v234_v13 }
  0xfc   : > { %v763_v20 = vpop.f32.mrb[0].mxu0 }
  0xfd   : > { %v636_v21 = vpop.f32.mrb[1].mxu0 }
 0x100   : > { %v748_v22 = vpop.f32.mrb[0].mxu1 }
 0x101   : > { %v764_v23 = vadd.f32 %v763_v20, %v748_v22  ;;  %v395_v24 = vpop.f32.mrb[1].mxu1 }
 0x102   : > { %v765_v25 = vadd.f32 %v636_v21, %v395_v24 }
 0x103   : > { %648 = vst.msk [vmem:[%s145_s20 + $0x8] sm:$0xff] %vm646_vm1, %v764_v23 }
 0x104   : > { %647 = vst.msk [vmem:[%s145_s20] sm:$0xff] %vm646_vm1, %v765_v25 }
 0x105 PF: > { %s12_s9 = sadd.s32 1, %s788_s9  }
 0x106   : > { %p9_p4 = scmp.ge.s32.totalorder %s12_s9, 6  }
 0x108   :  { %11 = sbr.rel (!%p9_p4) target bundleno = 1 (0x1), region = 58 }

</bundles_post_ra>
